<compile_context>
chip_gen: v7x
topology: tpu7x:2x2x1
jax: 0.10.0
libtpu: 0.0.40
codegen_flags: <defaults>
</compile_context>

<pallas_src>
import functools

import jax
import jax.numpy as jnp
import numpy as np
from jax.experimental import pallas as pl
from jax.experimental.pallas import tpu as pltpu


def _round_up(v: int, m: int) -> int:
    return ((v + m - 1) // m) * m


def _rfft_kernel(x_ref, w_ref, out_ref):
    # x_ref:   (TM, L)        float32
    # w_ref:   (L, 2*F_pad)   float32  -- [cos | -sin] bases, zero-padded cols
    # out_ref: (TM, 2*F_pad)  float32  -- [Re | Im] (padded)
    out_ref[...] = jnp.dot(
        x_ref[...], w_ref[...], preferred_element_type=jnp.float32
    )


@functools.lru_cache(maxsize=16)
def _dft_basis(L: int, F_pad: int):
    """Fused [cos | -sin] real-DFT basis, zero-padded to lane-aligned width."""
    F = L // 2 + 1
    n = np.arange(L)[:, None]          # (L, 1)
    k = np.arange(F)[None, :]          # (1, F)
    ang = 2.0 * np.pi * n * k / L
    w = np.zeros((L, 2 * F_pad), dtype=np.float32)
    w[:, :F] = np.cos(ang)
    w[:, F_pad:F_pad + F] = -np.sin(ang)
    return jnp.asarray(w)


def fourier_decomp(x, *, tm: int = 512):
    """Pallas equivalent of torch.fft.rfft(x, dim=-1) for real float input."""
    orig_shape = x.shape
    L = orig_shape[-1]
    F = L // 2 + 1
    F_pad = _round_up(F, 128)
    M = int(np.prod(orig_shape[:-1])) if len(orig_shape) > 1 else 1

    x2d = x.reshape(M, L).astype(jnp.float32)

    # Row-tile size: multiple of 8 (sublane), capped by the (padded) M.
    TM = min(tm, _round_up(M, 8))
    M_pad = _round_up(M, TM)
    if M_pad != M:
        x2d = jnp.pad(x2d, ((0, M_pad - M), (0, 0)))

    w = _dft_basis(L, F_pad)
    grid_m = M_pad // TM

    out = pl.pallas_call(
        _rfft_kernel,
        out_shape=jax.ShapeDtypeStruct((M_pad, 2 * F_pad), jnp.float32),
        grid=(grid_m,),
        in_specs=[
            pl.BlockSpec((TM, L), lambda i: (i, 0)),          # x row tiles
            pl.BlockSpec((L, 2 * F_pad), lambda i: (0, 0)),   # full fused basis
        ],
        out_specs=pl.BlockSpec((TM, 2 * F_pad), lambda i: (i, 0)),
        compiler_params=pltpu.CompilerParams(
            dimension_semantics=("parallel",),
            vmem_limit_bytes=64 * 1024 * 1024,
        ),
    )(x2d, w)

    # Static slices: drop row padding and frequency padding, split Re/Im.
    re = out[:M, :F]
    im = out[:M, F_pad:F_pad + F]
    x_ft = (re + 1j * im).astype(jnp.complex64)
    return x_ft.reshape(*orig_shape[:-1], F)


if __name__ == "__main__":
    key = jax.random.PRNGKey(0)
    # Small shapes consistent with a (batch, channels, seq_len) input.
    B, C, L = 2, 4, 16
    x = jax.random.normal(key, (B, C, L), dtype=jnp.float32)

    x_ft = fourier_decomp(x)
    x_ft = jax.block_until_ready(x_ft)

    # Correctness check against jnp.fft.rfft (same semantics as torch.fft.rfft).
    ref = jnp.fft.rfft(x, axis=-1)
    np.testing.assert_allclose(np.asarray(x_ft), np.asarray(ref),
                               rtol=1e-4, atol=1e-4)

    print("KERNEL_OK")
</pallas_src>

<mosaic_0001>
module attributes {stable_mosaic.version = 11 : i64} {
  func.func @_rfft_kernel(%arg0: i32, %arg1: memref<8x16xf32, #tpu.memory_space<vmem>>, %arg2: memref<16x256xf32, #tpu.memory_space<vmem>>, %arg3: memref<8x256xf32, #tpu.memory_space<vmem>>) attributes {dimension_semantics = [#tpu.dimension_semantics<parallel>], iteration_bounds = array<i64: 1>, scalar_prefetch = 0 : i64, scratch_operands = 0 : i64, tpu.core_type = #tpu.core_type<tc>, window_params = [{transform_indices = @transform_0, window_bounds = array<i64: 8, 16>}, {pipeline_mode = #tpu.pipeline_mode<synchronous>, transform_indices = @transform_1, window_bounds = array<i64: 16, 256>}, {transform_indices = @transform_2, window_bounds = array<i64: 8, 256>}]} {
    %c0 = arith.constant 0 : index
    %c0_0 = arith.constant 0 : index
    %0 = vector.load %arg1[%c0, %c0_0] : memref<8x16xf32, #tpu.memory_space<vmem>>, vector<8x16xf32>
    %c0_1 = arith.constant 0 : index
    %c0_2 = arith.constant 0 : index
    %1 = vector.load %arg2[%c0_1, %c0_2] : memref<16x256xf32, #tpu.memory_space<vmem>>, vector<16x256xf32>
    %cst = arith.constant dense<0.000000e+00> : vector<8x256xf32>
    %2 = tpu.matmul %0, %1, %cst {dimension_numbers = #tpu.dot_dimension_numbers<[1], [0], [0], [1], [0, 0, 1, 1], [], []>} : vector<8x16xf32>, vector<16x256xf32>, vector<8x256xf32> -> vector<8x256xf32>
    %c0_3 = arith.constant 0 : index
    %c0_4 = arith.constant 0 : index
    %3 = vector.load %arg3[%c0_3, %c0_4] : memref<8x256xf32, #tpu.memory_space<vmem>>, vector<8x256xf32>
    tpu.vector_store %arg3[%c0_3, %c0_4], %2 {strides = array<i32>} : memref<8x256xf32, #tpu.memory_space<vmem>>, vector<8x256xf32>,
    return
  }
  func.func @transform_0(%arg0: i32) -> (i32, i32) {
    %c0_i32 = arith.constant 0 : i32
    %c0_i32_0 = arith.constant 0 : i32
    return %arg0, %c0_i32 : i32, i32
  }
  func.func @transform_1(%arg0: i32) -> (i32, i32) {
    %c0_i32 = arith.constant 0 : i32
    %c0_i32_0 = arith.constant 0 : i32
    %c0_i32_1 = arith.constant 0 : i32
    return %c0_i32, %c0_i32_0 : i32, i32
  }
  func.func @transform_2(%arg0: i32) -> (i32, i32) {
    %c0_i32 = arith.constant 0 : i32
    %c0_i32_0 = arith.constant 0 : i32
    return %arg0, %c0_i32 : i32, i32
  }
}

</mosaic_0001>

<bundles_post_ra>
// kernel: tpu_custom_call.1
= control target key start
LH: loop header
LB: loop body
LE: loop exit
PB: predicated region body
PF: predicated region fallthrough
CT: control target
= control target key end

     0   :  { %7 = vsyncpa [#allocation3], 0  ;;  %s283_s0 = inlined_call_operand.hbm [shape: f32[8,16], index: 0, kind: input, shape index: {}]   ;;  %s284_s1 = inlined_call_operand.hbm [shape: f32[16,256], index: 1, kind: input, shape index: {}]   ;;  %s285_s2 = inlined_call_operand.hbm [shape: f32[8,256], index: 2, kind: output, shape index: {}]  }
   0x1   :  { %8 = vsyncpa [#allocation6], 0 }
   0x2   :  { %9 = vsyncpa [#allocation4], 0  ;;  %s219_s9 = smov [#allocation2]   ;;  %s220_s11 = smov [#allocation5]  }
   0x3   :  { %s16_s10 = sshll.u32 %s219_s9, 4  ;;  %s25_s12 = sshll.u32 %s220_s11, 4  ;;  %s17_s10 = int_to_ptr.vmem [resolvable:$true] %s16_s10  ;;  %s240_s12 = int_to_ptr.vmem [resolvable:$true] %s25_s12 }
   0x4   :  { %s147_s15 = scalar_lea.hbm %s283_s0, 128 }
   0x5   :  { %p148_p0 = scmp.ne.s32.totalorder %s283_s0, %s147_s15  ;;  %p151_p1 = scmp.lt.u32.totalorder %s147_s15, %s283_s0 }
   0x7   :  { %p153_p2 = pnand %p151_p1, %p148_p0 }
   0x9   :  { %156 = shalt.err (!%p153_p2)
}
   0xa   :  { %s157_s20 = scalar_lea.vmem %s17_s10, 128  ;;  %p162_p4 = scmp.lt.s32.totalorder %s17_s10, %s17_s10 }
   0xb   :  { %p158_p3 = scmp.ne.s32.totalorder %s17_s10, %s157_s20  ;;  %p163_p5 = scmp.lt.s32.totalorder %s157_s20, %s157_s20 }
   0xd   :  { %p164_p6 = por %p163_p5, %p162_p4 }
   0xf   :  { %p165_p7 = pnand %p164_p6, %p158_p3 }
  0x11   :  { %168 = shalt.err (!%p165_p7)
}
  0x12   :  { %19 = dma.hbm_to_vmem [thread:$0]  %s283_s0, 128, %s17_s10, [#allocation3]  }
  0x13   :  { %s169_s25 = scalar_lea.hbm %s284_s1, 512 }
  0x14   :  { %p170_p8 = scmp.ne.s32.totalorder %s284_s1, %s169_s25  ;;  %p173_p9 = scmp.lt.u32.totalorder %s169_s25, %s284_s1 }
  0x16   :  { %p175_p10 = pnand %p173_p9, %p170_p8 }
  0x18   :  { %178 = shalt.err (!%p175_p10)
}
  0x19   :  { %s179_s30 = scalar_lea.vmem %s240_s12, 512  ;;  %p184_p12 = scmp.lt.s32.totalorder %s240_s12, %s240_s12 }
  0x1a   :  { %p180_p11 = scmp.ne.s32.totalorder %s240_s12, %s179_s30  ;;  %p185_p13 = scmp.lt.s32.totalorder %s179_s30, %s179_s30 }
  0x1c   :  { %p186_p0 = por %p185_p13, %p184_p12 }
  0x1e   :  { %p187_p1 = pnand %p186_p0, %p180_p11 }
  0x20   :  { %190 = shalt.err (!%p187_p1)
}
  0x21   :  { %s221_s0 = smov 256   ;;  %s222_s3 = smov 16  }
  0x22   :  { %31 = dma.hbm_to_vmem [thread:$0]  %s284_s1, 512, %s240_s12, [#allocation6], %s221_s0, %s221_s0, %s222_s3  }
  0x23   :  { %213 = dma.done.wait [#allocation3], 128  }
  0x24   :  { %214 = vsyncadd [#allocation3], 4294967168 }
  0x25   :  { %215 = dma.done.wait [#allocation6], 512  }
  0x26   :  { %216 = vsyncadd [#allocation6], 4294966784  ;;  %v223_v0 = vmov 0.0   ;;  %v40_v1 = vld [vmem:[#allocation5 + $0x8] sm:$0xff]  ;;  %v42_v2 = vld [vmem:[#allocation5 + $0x18] sm:$0xff]  ;;  %vm43_vm0 = vcmask 130048  }
  0x27   :  { %111 = vmatprep.mubr.f32.mxu0 %v223_v0  ;;  %v39_v3 = vld [vmem:[#allocation5] sm:$0xff]  ;;  %v137_v4 = vpack.c.bf16 %v42_v2, %v40_v1  ;;  %v41_v5 = vld [vmem:[#allocation5 + $0x10] sm:$0xff]  ;;  %v38_v7 = vld [vmem:[#allocation2] sm:$0xff]  ;;  %s224_s6 = smov [#allocation7]  }
  0x28   :  { %v139_v6 = vpack.c.bf16 %v41_v5, %v39_v3  ;;  %s126_s7 = sshll.u32 %s224_s6, 4  ;;  %s127_s7 = int_to_ptr.vmem [resolvable:$true] %s126_s7 }
  0x29   :  { %138 = vmatprep.subr.bf16.mxu0 %v137_v4  ;;  %s191_s1 = scalar_lea.vmem %s127_s7, 256  ;;  %p196_p3 = scmp.lt.s32.totalorder %s127_s7, %s127_s7 }
  0x2a   :  { %140 = vmatpush1.bf16.msra.mxu0 %v139_v6  ;;  %p192_p2 = scmp.ne.s32.totalorder %s127_s7, %s191_s1  ;;  %p197_p4 = scmp.lt.s32.totalorder %s191_s1, %s191_s1 }
  0x2c   :  { %p198_p5 = por %p197_p4, %p196_p3 }
  0x2d   :  { %136 = vmatmul.mubr.msk.f32.vlgmr.msra.gmra.mrb[0].mxu0 %vm43_vm0, %v38_v7 }
  0x2e   :  { %p199_p6 = pnand %p198_p5, %p192_p2 }
 0x100   :  { %v113_v8 = vpop.f32.mrb[0].mxu0 }
 0x101   :  { %118 = vst [vmem:[#allocation7] sm:$0xff] %v113_v8  ;;  %v115_v9 = vpop.f32.mrb[1].mxu0 }
 0x102   :  { %119 = vst [vmem:[#allocation7 + $0x8] sm:$0xff] %v115_v9 }
 0x103   :  { %202 = shalt.err (!%p199_p6)
}
 0x104   :  { %s203_s10 = scalar_lea.hbm %s285_s2, 256 }
 0x105   :  { %p204_p7 = scmp.ne.s32.totalorder %s285_s2, %s203_s10  ;;  %p207_p8 = scmp.lt.u32.totalorder %s203_s10, %s285_s2 }
 0x107   :  { %p209_p9 = pnand %p207_p8, %p204_p7 }
 0x109   :  { %212 = shalt.err (!%p209_p9)
}
 0x10a   :  { %129 = dma.vmem_to_hbm [thread:$0]  %s127_s7, 256, %s285_s2, [#allocation4]  }
 0x10b   :  { %217 = dma.done.wait [#allocation4], 256  }
 0x10c   :  { %218 = vsyncadd [#allocation4], 4294967040 }
 0x10d   :  { %133 = vsyncpa [#allocation3], 1 }
 0x10e   :  { %134 = vsyncpa [#allocation6], 1 }
 0x10f   :  { %135 = vsyncpa [#allocation4], 1 }

</bundles_post_ra>
